<compile_context>
chip_gen: v5e
topology: v5e:2x2
jax: 0.10.0
libtpu: 0.0.40
codegen_flags: <defaults>
</compile_context>

<pallas_src>
import functools
import math

import jax
import jax.numpy as jnp
from jax import lax
from jax.experimental import pallas as pl
from jax.experimental.pallas import tpu as pltpu

EPS = 1e-8
SCALE_INIT = 1.0
MAX_ROW_TILE = 2048                # rows (each D*128 lanes wide) per grid step
VMEM_LIMIT_BYTES = 48 * 1024 * 1024


def _coords_norm_kernel(scale_ref, x_ref, o_ref, *, d):
    """x_ref / o_ref: (ROW_TILE, d*128) lane-dense tiles of the flat interleaved
    coordinate stream.  scale_ref: (1,) f32 scalar in SMEM."""
    w = x_ref.shape[-1]
    xf = x_ref[...].astype(jnp.float32)
    s = xf * xf

    # Lane position within its D-group.  Row starts are multiples of d because
    # w = d*128 is a multiple of d, so lane%d == flat_index%d.
    lane_mod = lax.broadcasted_iota(jnp.int32, (1, w), 1) % d

    # Per-point (per-group-of-d) sum of squares, broadcast to every lane of the
    # group: lane with r = lane%d adds s[l+k] iff r+k <= d-1 and s[l-k] iff r>=k.
    # Static lane rotations -> XLU slot, tiny (1, w) masks -> VPU broadcast.
    sq = s
    for k in range(1, d):
        m_plus = (lane_mod <= (d - 1 - k)).astype(jnp.float32)
        m_minus = (lane_mod >= k).astype(jnp.float32)
        sq = sq + pltpu.roll(s, w - k, axis=1) * m_plus    # brings s[l+k]
        sq = sq + pltpu.roll(s, k, axis=1) * m_minus       # brings s[l-k]

    # torch: coords / norm.clamp(min=eps)  ==  coords * rsqrt(max(sq, eps^2))
    inv = lax.rsqrt(jnp.maximum(sq, jnp.float32(EPS * EPS)))
    o_ref[...] = (xf * (inv * scale_ref[0])).astype(o_ref.dtype)


def coords_norm(coords, scale):
    """coords: (..., D) array.  scale: (1,) learned scalar parameter."""
    orig_shape = coords.shape
    orig_dtype = coords.dtype
    d = orig_shape[-1]
    total = math.prod(orig_shape)

    w = d * 128                        # lane width: multiple of both 128 and d
    flat = coords.reshape(total)       # free reshape (contiguous), no transpose
    pad = (-total) % w
    if pad:                            # only for awkward sizes: whole zero groups
        flat = jnp.pad(flat, (0, pad))
    r = (total + pad) // w
    x2d = flat.reshape(r, w)           # free reshape

    row_tile = r if r <= MAX_ROW_TILE else MAX_ROW_TILE
    grid = (pl.cdiv(r, row_tile),)

    out2d = pl.pallas_call(
        functools.partial(_coords_norm_kernel, d=d),
        out_shape=jax.ShapeDtypeStruct((r, w), orig_dtype),
        grid=grid,
        in_specs=[
            pl.BlockSpec(memory_space=pltpu.MemorySpace.SMEM),   # scale (1,)
            pl.BlockSpec((row_tile, w), lambda i: (i, 0)),       # coords tile
        ],
        out_specs=pl.BlockSpec((row_tile, w), lambda i: (i, 0)),
        compiler_params=pltpu.CompilerParams(
            dimension_semantics=("parallel",),
            vmem_limit_bytes=VMEM_LIMIT_BYTES,
        ),
    )(scale.astype(jnp.float32), x2d)

    out_flat = out2d.reshape(r * w)
    if pad:
        out_flat = out_flat[:total]
    return out_flat.reshape(orig_shape)


def coords_norm_ref(coords, scale):
    cf = coords.astype(jnp.float32)
    norm = jnp.linalg.norm(cf, axis=-1, keepdims=True)
    return cf / jnp.maximum(norm, EPS) * scale[0]


if __name__ == "__main__":
    key = jax.random.PRNGKey(0)
    k1, k2, k3 = jax.random.split(key, 3)

    # deterministic parameter init, matching nn.Parameter(torch.zeros(1).fill_(scale_init))
    scale = jnp.full((1,), SCALE_INIT, dtype=jnp.float32)

    # main case: 2 graphs x 256 nodes x 3-D coordinates (no padding path)
    coords = jax.random.normal(k1, (2, 256, 3), dtype=jnp.float32)
    out = jax.block_until_ready(coords_norm(coords, scale))
    ref = coords_norm_ref(coords, scale)
    assert out.shape == coords.shape and out.dtype == coords.dtype
    assert jnp.allclose(out, ref, atol=1e-5, rtol=1e-5)

    # awkward size: total not a multiple of 384 -> padded path
    coords2 = jax.random.normal(k2, (2, 8, 3), dtype=jnp.float32)
    out2 = jax.block_until_ready(coords_norm(coords2, scale))
    ref2 = coords_norm_ref(coords2, scale)
    assert out2.shape == coords2.shape
    assert jnp.allclose(out2, ref2, atol=1e-5, rtol=1e-5)

    # bf16 carry (halves HBM bytes for this purely bandwidth-bound op)
    coords3 = jax.random.normal(k3, (4, 128, 3), dtype=jnp.bfloat16)
    out3 = jax.block_until_ready(coords_norm(coords3, scale))
    ref3 = coords_norm_ref(coords3, scale)
    assert out3.dtype == jnp.bfloat16
    assert jnp.allclose(out3.astype(jnp.float32), ref3, atol=2e-2, rtol=2e-2)

    print("KERNEL_OK")
</pallas_src>

<mosaic_0001>
module attributes {stable_mosaic.version = 11 : i64} {
  func.func @_coords_norm_kernel(%arg0: i32, %arg1: memref<1xf32, #tpu.memory_space<smem>>, %arg2: memref<4x384xf32, #tpu.memory_space<vmem>>, %arg3: memref<4x384xf32, #tpu.memory_space<vmem>>) attributes {dimension_semantics = [#tpu.dimension_semantics<parallel>], iteration_bounds = array<i64: 1>, scalar_prefetch = 0 : i64, scratch_operands = 0 : i64, tpu.core_type = #tpu.core_type<tc>, window_params = [{transform_indices = @transform_0, window_bounds = array<i64: 1>}, {transform_indices = @transform_1, window_bounds = array<i64: 4, 384>}, {transform_indices = @transform_2, window_bounds = array<i64: 4, 384>}]} {
    %c0 = arith.constant 0 : index
    %c0_0 = arith.constant 0 : index
    %0 = vector.load %arg2[%c0, %c0_0] : memref<4x384xf32, #tpu.memory_space<vmem>>, vector<4x384xf32>
    %1 = arith.mulf %0, %0 : vector<4x384xf32>
    %2 = tpu.iota {dimensions = array<i32: 1>} : vector<1x384xi32>
    %c3_i32 = arith.constant 3 : i32
    %c0_i32 = arith.constant 0 : i32
    %3 = arith.cmpi eq, %c3_i32, %c0_i32 : i32
    %c1_i32 = arith.constant 1 : i32
    %4 = arith.select %3, %c1_i32, %c3_i32 : i32
    %5 = vector.broadcast %4 : i32 to vector<1x384xi32>
    %6 = arith.remsi %2, %5 : vector<1x384xi32>
    %c0_i32_1 = arith.constant 0 : i32
    %7 = vector.broadcast %c0_i32_1 : i32 to vector<1x384xi32>
    %8 = arith.cmpi ne, %6, %7 : vector<1x384xi32>
    %c0_i32_2 = arith.constant 0 : i32
    %9 = vector.broadcast %c0_i32_2 : i32 to vector<1x384xi32>
    %10 = arith.cmpi slt, %6, %9 : vector<1x384xi32>
    %c0_i32_3 = arith.constant 0 : i32
    %11 = arith.cmpi slt, %4, %c0_i32_3 : i32
    %12 = vector.broadcast %11 : i1 to vector<1x384xi1>
    %13 = vector.broadcast %12 : vector<1x384xi1> to vector<1x384xi1>
    %14 = arith.xori %10, %13 : vector<1x384xi1>
    %15 = arith.andi %14, %8 : vector<1x384xi1>
    %16 = vector.broadcast %4 : i32 to vector<1x384xi32>
    %17 = arith.addi %6, %16 : vector<1x384xi32>
    %18 = arith.select %15, %17, %6 : vector<1x384xi1>, vector<1x384xi32>
    %c1_i32_4 = arith.constant 1 : i32
    %19 = vector.broadcast %c1_i32_4 : i32 to vector<1x384xi32>
    %20 = arith.cmpi sle, %18, %19 : vector<1x384xi32>
    %21 = arith.extui %20 : vector<1x384xi1> to vector<1x384xi32>
    %22 = arith.sitofp %21 : vector<1x384xi32> to vector<1x384xf32>
    %c1_i32_5 = arith.constant 1 : i32
    %23 = vector.broadcast %c1_i32_5 : i32 to vector<1x384xi32>
    %24 = arith.cmpi sge, %18, %23 : vector<1x384xi32>
    %25 = arith.extui %24 : vector<1x384xi1> to vector<1x384xi32>
    %26 = arith.sitofp %25 : vector<1x384xi32> to vector<1x384xf32>
    %c383_i32 = arith.constant 383 : i32
    %27 = tpu.dynamic_rotate %1 by %c383_i32 dim 1 : vector<4x384xf32>, i32 -> vector<4x384xf32>
    %28 = vector.broadcast %22 : vector<1x384xf32> to vector<4x384xf32>
    %29 = arith.mulf %27, %28 : vector<4x384xf32>
    %30 = arith.addf %1, %29 : vector<4x384xf32>
    %c1_i32_6 = arith.constant 1 : i32
    %31 = tpu.dynamic_rotate %1 by %c1_i32_6 dim 1 : vector<4x384xf32>, i32 -> vector<4x384xf32>
    %32 = vector.broadcast %26 : vector<1x384xf32> to vector<4x384xf32>
    %33 = arith.mulf %31, %32 : vector<4x384xf32>
    %34 = arith.addf %30, %33 : vector<4x384xf32>
    %c0_i32_7 = arith.constant 0 : i32
    %35 = vector.broadcast %c0_i32_7 : i32 to vector<1x384xi32>
    %36 = arith.cmpi sle, %18, %35 : vector<1x384xi32>
    %37 = arith.extui %36 : vector<1x384xi1> to vector<1x384xi32>
    %38 = arith.sitofp %37 : vector<1x384xi32> to vector<1x384xf32>
    %c2_i32 = arith.constant 2 : i32
    %39 = vector.broadcast %c2_i32 : i32 to vector<1x384xi32>
    %40 = arith.cmpi sge, %18, %39 : vector<1x384xi32>
    %41 = arith.extui %40 : vector<1x384xi1> to vector<1x384xi32>
    %42 = arith.sitofp %41 : vector<1x384xi32> to vector<1x384xf32>
    %c382_i32 = arith.constant 382 : i32
    %43 = tpu.dynamic_rotate %1 by %c382_i32 dim 1 : vector<4x384xf32>, i32 -> vector<4x384xf32>
    %44 = vector.broadcast %38 : vector<1x384xf32> to vector<4x384xf32>
    %45 = arith.mulf %43, %44 : vector<4x384xf32>
    %46 = arith.addf %34, %45 : vector<4x384xf32>
    %c2_i32_8 = arith.constant 2 : i32
    %47 = tpu.dynamic_rotate %1 by %c2_i32_8 dim 1 : vector<4x384xf32>, i32 -> vector<4x384xf32>
    %48 = vector.broadcast %42 : vector<1x384xf32> to vector<4x384xf32>
    %49 = arith.mulf %47, %48 : vector<4x384xf32>
    %50 = arith.addf %46, %49 : vector<4x384xf32>
    %cst = arith.constant 1.000000e-16 : f32
    %51 = vector.broadcast %cst : f32 to vector<4x384xf32>
    %52 = arith.maximumf %50, %51 : vector<4x384xf32>
    %53 = math.rsqrt %52 : vector<4x384xf32>
    %c0_9 = arith.constant 0 : index
    %54 = memref.load %arg1[%c0_9] : memref<1xf32, #tpu.memory_space<smem>>
    %55 = vector.broadcast %54 : f32 to vector<4x384xf32>
    %56 = arith.mulf %53, %55 : vector<4x384xf32>
    %57 = arith.mulf %0, %56 : vector<4x384xf32>
    %c0_10 = arith.constant 0 : index
    %c0_11 = arith.constant 0 : index
    %58 = vector.load %arg3[%c0_10, %c0_11] : memref<4x384xf32, #tpu.memory_space<vmem>>, vector<4x384xf32>
    tpu.vector_store %arg3[%c0_10, %c0_11], %57 {strides = array<i32>} : memref<4x384xf32, #tpu.memory_space<vmem>>, vector<4x384xf32>,
    return
  }
  func.func @transform_0(%arg0: i32) -> i32 {
    %c0_i32 = arith.constant 0 : i32
    %c0_i32_0 = arith.constant 0 : i32
    return %c0_i32 : i32
  }
  func.func @transform_1(%arg0: i32) -> (i32, i32) {
    %c0_i32 = arith.constant 0 : i32
    %c0_i32_0 = arith.constant 0 : i32
    return %arg0, %c0_i32 : i32, i32
  }
  func.func @transform_2(%arg0: i32) -> (i32, i32) {
    %c0_i32 = arith.constant 0 : i32
    %c0_i32_0 = arith.constant 0 : i32
    return %arg0, %c0_i32 : i32, i32
  }
}

</mosaic_0001>

<bundles_post_ra>
// kernel: tpu_custom_call.1
= control target key start
LH: loop header
LB: loop body
LE: loop exit
PB: predicated region body
PF: predicated region fallthrough
CT: control target
= control target key end

     0   :  { %8 = vsyncpa [#allocation4], 0  ;;  %s521_s0 = inlined_call_operand.<no memory space> [shape: f32[1], index: 0, kind: input, shape index: {}]   ;;  %s522_s1 = inlined_call_operand.hbm [shape: f32[4,384], index: 1, kind: input, shape index: {}]   ;;  %s523_s2 = inlined_call_operand.hbm [shape: f32[4,384], index: 2, kind: output, shape index: {}]  }
   0x1   :  { %9 = vsyncpa [#allocation5], 0  ;;  %s17_s11 = sshll.u32 %s522_s1, 4  ;;  %s415_s12 = smov [#allocation3]   ;;  %s18_s11 = int_to_ptr.hbm [resolvable:$true] %s17_s11 }
   0x2   :  { %s19_s13 = sshll.u32 %s415_s12, 4  ;;  %s20_s13 = int_to_ptr.vmem [resolvable:$true] %s19_s13 }
   0x3   :  { %22 = dma.hbm_to_vmem [thread:$0]  %s18_s11, 192, %s20_s13, [#allocation4]  }
   0x4   :  { %411 = dma.done.wait [#allocation4], 192  }
   0x5   :  { %412 = vsyncadd [#allocation4], 4294967104  ;;  %v441_v0 = vld [vmem:[#allocation3] sm:$0xff]  ;;  %v443_v1 = vld [vmem:[#allocation3 + $0x8] sm:$0xf]  ;;  %s416_s1 = smov 127   ;;  %v31_v16 = vlaneseq }
   0x6   :  { %v447_v2 = vmul.f32 %v441_v0, %v441_v0  ;;  %v451_v3 = vmul.f32 %v443_v1, %v443_v1  ;;  %s417_s14 = smov 1   ;;  %s418_s15 = smov 126   ;;  %v420_v41 = vmov 0  }
   0x7   :  { %s419_s16 = smov 2   ;;  %v461_v17 = vand.u32 127, %v31_v16  ;;  %s422_s19 = smov [#allocation6]  }
   0x8   :  { %157 = vst [vmem:[#allocation1] ss:$2 sm:$0xff] %v447_v2  ;;  %s327_s20 = sshll.u32 %s422_s19, 4  ;;  %s329_s23 = sshll.u32 %s523_s2, 4  ;;  %s328_s20 = int_to_ptr.vmem [resolvable:$true] %s327_s20  ;;  %s330_s23 = int_to_ptr.hbm [resolvable:$true] %s329_s23 }
   0x9   :  { %159 = vst [vmem:[#allocation1 + $0x10] ss:$2 sm:$0xff] %v451_v3  ;;  %v464_v18 = vadd.s32 128, %v461_v17  ;;  %v467_v19 = vadd.s32 256, %v461_v17  ;;  %v38_v22 = vand.u32 65535, %v461_v17  ;;  %v39_v28 = vshrl.u32 %v461_v17, 16 }
   0xb   :  { %v67_v20 = vand.u32 65535, %v464_v18  ;;  %v68_v21 = vshrl.u32 %v464_v18, 16  ;;  %v96_v24 = vand.u32 65535, %v467_v19  ;;  %v42_v29 = vmul.u32 43690, %v38_v22 }
   0xc   :  { %v97_v30 = vshrl.u32 %v467_v19, 16  ;;  %v41_v34 = vmul.u32 43691, %v38_v22  ;;  %v43_v35 = vmul.u32 43691, %v39_v28  ;;  %v44_v48 = vmul.u32 43690, %v39_v28 }
   0xd   :  { %v71_v23 = vmul.u32 43690, %v67_v20  ;;  %v70_v25 = vmul.u32 43691, %v67_v20  ;;  %v72_v26 = vmul.u32 43691, %v68_v21  ;;  %v100_v31 = vmul.u32 43690, %v96_v24 }
   0xe   :  { %v45_v36 = vshll.u32 %v42_v29, 16  ;;  %v99_v37 = vmul.u32 43691, %v96_v24  ;;  %v101_v38 = vmul.u32 43691, %v97_v30  ;;  %v73_v40 = vmul.u32 43690, %v68_v21 }
   0xf   :  { %v161_v4 = vld.sshfl [vmem:[#allocation1 + $0x8] sm:$0xff pattern:$0x75316420]  ;;  %v160_v5 = vld.sshfl [vmem:[#allocation1] sm:$0xff pattern:$0x75316420] }
  0x10   :  { %168 = vrot.lane.b32.xlu0 %v161_v4, %s416_s1  ;;  %166 = vrot.lane.b32.xlu1 %v160_v5, %s416_s1  ;;  %187 = vst [vmem:[#allocation1] ss:$2 sm:$0xff] %v447_v2  ;;  %v162_v6 = vld.sshfl [vmem:[#allocation1 + $0x10] sm:$0xff pattern:$0x75316420]  ;;  %v74_v27 = vshll.u32 %v71_v23, 16  ;;  %vm49_vm2 = vc.u32 %v41_v34, %v45_v36  ;;  %v51_v44 = vadd.s32 %v45_v36, %v41_v34 }
  0x11   :  { %189 = vst [vmem:[#allocation1 + $0x10] ss:$2 sm:$0xff] %v451_v3  ;;  %v76_v32 = vshll.u32 %v72_v26, 16  ;;  %v103_v39 = vshll.u32 %v100_v31, 16  ;;  %v47_v43 = vshll.u32 %v43_v35, 16  ;;  %v105_v45 = vshll.u32 %v101_v38, 16 }
  0x12   :  { %vm78_vm0 = vc.u32 %v70_v25, %v74_v27  ;;  %v80_v33 = vadd.s32 %v74_v27, %v70_v25  ;;  %v50_v50 = vsel %vm49_vm2, 1, %v420_v41  ;;  %v102_v51 = vmul.u32 43690, %v97_v30 }
  0x13   :  { %v79_v42 = vsel %vm78_vm0, 1, %v420_v41  ;;  %vm107_vm3 = vc.u32 %v99_v37, %v103_v39  ;;  %v109_v46 = vadd.s32 %v103_v39, %v99_v37  ;;  %vm53_vm4 = vc.u32 %v51_v44, %v47_v43 }
  0x14   :  { %vm82_vm1 = vc.u32 %v80_v33, %v76_v32  ;;  %v81_v47 = vadd.s32 %v79_v42, %v73_v40  ;;  %v108_v52 = vsel %vm107_vm3, 1, %v420_v41  ;;  %v75_v53 = vshrl.u32 %v71_v23, 16 }
  0x15   :  { %v83_v49 = vsel %vm82_vm1, 1, %v420_v41  ;;  %vm111_vm5 = vc.u32 %v109_v46, %v105_v45  ;;  %v52_v55 = vadd.s32 %v50_v50, %v44_v48  ;;  %v54_v56 = vsel %vm53_vm4, 1, %v420_v41 }
  0x16   :  { %v85_v54 = vadd.s32 %v83_v49, %v81_v47  ;;  %v110_v57 = vadd.s32 %v108_v52, %v102_v51  ;;  %v112_v58 = vsel %vm111_vm5, 1, %v420_v41  ;;  %v77_v59 = vshrl.u32 %v72_v26, 16 }
  0x17   :  { %v190_v7 = vld.sshfl [vmem:[#allocation1] sm:$0xff pattern:$0x75316420]  ;;  %v191_v8 = vld.sshfl [vmem:[#allocation1 + $0x8] sm:$0xff pattern:$0x75316420]  ;;  %v56_v62 = vadd.s32 %v54_v56, %v52_v55 }
  0x18   :  { %v192_v9 = vld.sshfl [vmem:[#allocation1 + $0x10] sm:$0xff pattern:$0x75316420]  ;;  %170 = vrot.lane.b32.xlu0 %v162_v6, %s416_s1  ;;  %196 = vrot.lane.b32.xlu1 %v190_v7, %s417_s14  ;;  %234 = vst [vmem:[#allocation1] ss:$2 sm:$0xff] %v447_v2  ;;  %v86_v60 = vadd.s32 %v85_v54, %v75_v53  ;;  %v46_v61 = vshrl.u32 %v42_v29, 16  ;;  %v114_v4 = vadd.s32 %v112_v58, %v110_v57 }
  0x19   :  { %236 = vst [vmem:[#allocation1 + $0x10] ss:$2 sm:$0xff] %v451_v3  ;;  %198 = vrot.lane.b32.xlu2 %v191_v8, %s417_s14  ;;  %v104_v63 = vshrl.u32 %v100_v31, 16  ;;  %v48_v6 = vshrl.u32 %v43_v35, 16  ;;  %v106_v8 = vshrl.u32 %v101_v38, 16  ;;  %vm172_vm0 = vcmp.lt.s32.totalorder %v461_v17, 127 }
  0x1a   :  { %v87_v5 = vadd.s32 %v86_v60, %v77_v59  ;;  %v57_v7 = vadd.s32 %v56_v62, %v46_v61  ;;  %v421_v34 = vmov 0.0   ;;  %vm202_vm5 = vcmp.lt.s32.totalorder %v461_v17, 1 }
  0x1f   :  { %v238_v10 = vld.sshfl [vmem:[#allocation1 + $0x8] sm:$0xff pattern:$0x75316420]  ;;  %v237_v11 = vld.sshfl [vmem:[#allocation1] sm:$0xff pattern:$0x75316420] }
  0x20   :  { %v239_v12 = vld.sshfl [vmem:[#allocation1 + $0x10] sm:$0xff pattern:$0x75316420]  ;;  %245 = vrot.lane.b32.xlu0 %v238_v10, %s418_s15  ;;  %263 = vst [vmem:[#allocation1] ss:$2 sm:$0xff] %v447_v2  ;;  %v88_v10 = vshrl.u32 %v87_v5, 1 }
  0x21   :  { %265 = vst [vmem:[#allocation1 + $0x10] ss:$2 sm:$0xff] %v451_v3  ;;  %247 = vrot.lane.b32.xlu1 %v239_v12, %s418_s15  ;;  %200 = vrot.lane.b32.xlu2 %v192_v9, %s417_s14  ;;  %v115_v9 = vadd.s32 %v114_v4, %v104_v63 }
  0x23   :  { %v116_v12 = vadd.s32 %v115_v9, %v106_v8 }
  0x27   :  { %v267_v13 = vld.sshfl [vmem:[#allocation1 + $0x8] sm:$0xff pattern:$0x75316420]  ;;  %v266_v14 = vld.sshfl [vmem:[#allocation1] sm:$0xff pattern:$0x75316420] }
  0x28   :  { %272 = vrot.lane.b32.xlu0 %v266_v14, %s419_s16  ;;  %v268_v15 = vld.sshfl [vmem:[#allocation1 + $0x10] sm:$0xff pattern:$0x75316420] }
  0x29   :  { %274 = vrot.lane.b32.xlu1 %v267_v13, %s419_s16  ;;  %243 = vrot.lane.b32.xlu2 %v237_v11, %s418_s15  ;;  %v58_v11 = vadd.s32 %v57_v7, %v48_v6  ;;  %v89_v13 = vmul.u32 3, %v88_v10 }
  0x2b   :  { %v59_v14 = vshrl.u32 %v58_v11, 1  ;;  %v90_v16 = vsub.s32 %v464_v18, %v89_v13 }
  0x2d   :  { %v60_v21 = vmul.u32 3, %v59_v14  ;;  %vm123_vm6 = vcmp.ne.s32.totalorder %v90_v16, 0  ;;  %vm126_vm7 = vcmp.lt.s32.totalorder %v90_v16, 0  ;;  %v132_v27 = vadd.s32 3, %v90_v16 }
  0x2e   :  { %vm129_vm8 = vmand %vm126_vm7, %vm123_vm6  ;;  %vm249_vm7 = vcmp.lt.s32.totalorder %v461_v17, 126 }
  0x2f   :  { %v61_v23 = vsub.s32 %v461_v17, %v60_v21  ;;  %v478_v28 = vsel %vm129_vm8, %v132_v27, %v90_v16 }
  0x30   :  { %vm138_vm15 = vcmp.le.s32.totalorder %v478_v28, 1  ;;  %vm147_vm2 = vcmp.ge.s32.totalorder %v478_v28, 1  ;;  %vm217_vm4 = vcmp.le.s32.totalorder %v478_v28, 0 }
  0x31   :  { %276 = vrot.lane.b32.xlu2 %v268_v15, %s419_s16  ;;  %v117_v15 = vshrl.u32 %v116_v12, 1  ;;  %vm122_vm9 = vcmp.ne.s32.totalorder %v61_v23, 0  ;;  %vm125_vm10 = vcmp.lt.s32.totalorder %v61_v23, 0  ;;  %v131_v29 = vadd.s32 3, %v61_v23 }
  0x32   :  { %vm128_vm13 = vmand %vm125_vm10, %vm122_vm9  ;;  %v340_v35 = vsel %vm138_vm15, 1.0, %v421_v34  ;;  %v343_v41 = vsel %vm147_vm2, 1.0, %v421_v34  ;;  %v346_v45 = vsel %vm217_vm4, 1.0, %v421_v34  ;;  %vm182_vm10 = vcmask 1043456  }
  0x33   :  { %v118_v22 = vmul.u32 3, %v117_v15  ;;  %vm278_vm15 = vcmp.lt.s32.totalorder %v461_v17, 2 }
  0x35   :  { %v119_v26 = vsub.s32 %v467_v19, %v118_v22  ;;  %v134_v19 = vsel %vm128_vm13, %v131_v29, %v61_v23  ;;  %vm226_vm13 = vcmp.ge.s32.totalorder %v478_v28, 2 }
  0x36   :  { %vm137_vm3 = vcmp.le.s32.totalorder %v134_v19, 1  ;;  %vm146_vm8 = vcmp.ge.s32.totalorder %v134_v19, 1  ;;  %v349_v11 = vsel %vm226_vm13, 1.0, %v421_v34 }
  0x37   :  { %vm124_vm11 = vcmp.ne.s32.totalorder %v119_v26, 0  ;;  %vm127_vm12 = vcmp.lt.s32.totalorder %v119_v26, 0  ;;  %v133_v30 = vadd.s32 3, %v119_v26  ;;  %v339_v43 = vsel %vm137_vm3, 1.0, %v421_v34 }
  0x38   :  { %vm130_vm14 = vmand %vm127_vm12, %vm124_vm11  ;;  %v342_v54 = vsel %vm146_vm8, 1.0, %v421_v34  ;;  %vm216_vm11 = vcmp.le.s32.totalorder %v134_v19, 0 }
  0x39   :  { %v136_v33 = vsel %vm130_vm14, %v133_v30, %v119_v26  ;;  %v345_v63 = vsel %vm216_vm11, 1.0, %v421_v34  ;;  %vm225_vm14 = vcmp.ge.s32.totalorder %v134_v19, 2 }
  0x3a   :  { %vm139_vm1 = vcmp.le.s32.totalorder %v136_v33, 1  ;;  %vm148_vm6 = vcmp.ge.s32.totalorder %v136_v33, 1  ;;  %vm218_vm9 = vcmp.le.s32.totalorder %v136_v33, 0  ;;  %vm227_vm12 = vcmp.ge.s32.totalorder %v136_v33, 2 }
  0x3b   :  { %v341_v39 = vsel %vm139_vm1, 1.0, %v421_v34  ;;  %v344_v50 = vsel %vm148_vm6, 1.0, %v421_v34  ;;  %v347_v57 = vsel %vm218_vm9, 1.0, %v421_v34  ;;  %v350_v10 = vsel %vm227_vm12, 1.0, %v421_v34 }
  0x3c   :  { %v348_v16 = vsel %vm225_vm14, 1.0, %v421_v34 }
  0x73   :  { %v199_v20 = vpop.permute.xlu2 %198 }
  0x7b   :  { %v201_v18 = vpop.permute.xlu2 %200 }
  0x7c   :  { %v203_v56 = vsel %vm202_vm5, %v199_v20, %v201_v18 }
  0x7d   :  { %v208_v5 = vmul.f32 %v344_v50, %v203_v56 }
  0x82   :  { %v169_v24 = vpop.permute.xlu0 %168  ;;  %v167_v25 = vpop.permute.xlu1 %166 }
  0x83   :  { %v244_v38 = vpop.permute.xlu2 %243  ;;  %v174_v44 = vsel %vm172_vm0, %v167_v25, %v169_v24 }
  0x84   :  { %v176_v53 = vmul.f32 %v339_v43, %v174_v44  ;;  %v315_v43 = vstv %s521_s0 }
  0x8a   :  { %v171_v31 = vpop.permute.xlu0 %170  ;;  %v197_v32 = vpop.permute.xlu1 %196 }
  0x8b   :  { %v173_v36 = vsel %vm172_vm0, %v169_v24, %v171_v31  ;;  %v175_v40 = vsel %vm172_vm0, %v171_v31, %v167_v25  ;;  %v204_v42 = vsel %vm202_vm5, %v197_v32, %v199_v20  ;;  %v205_v61 = vsel %vm202_vm5, %v201_v18, %v197_v32  ;;  %v277_v8 = vpop.permute.xlu2 %276 }
  0x8c   :  { %v177_v37 = vmul.f32 %v340_v35, %v173_v36  ;;  %v178_v47 = vmul.f32 %v341_v39, %v175_v40  ;;  %v207_v51 = vmul.f32 %v343_v41, %v204_v42 }
  0x8e   :  { %v181_v48 = vrot.slane %v177_v37, 4  ;;  %v186_v60 = vadd.f32 %v178_v47, %v451_v3  ;;  %v211_v62 = vrot.slane %v207_v51, 4  ;;  %v206_v3 = vmul.f32 %v342_v54, %v205_v61 }
  0x90   :  { %v183_v59 = vsel %vm182_vm10, %v176_v53, %v181_v48  ;;  %v215_v13 = vadd.f32 %v208_v5, %v186_v60  ;;  %v212_v20 = vsel %vm182_vm10, %v206_v3, %v211_v62 }
  0x91   :  { %v185_v9 = vadd.f32 %v183_v59, %v447_v2 }
  0x92   :  { %v246_v46 = vpop.permute.xlu0 %245 }
  0x93   :  { %v248_v49 = vpop.permute.xlu1 %247  ;;  %v251_v4 = vsel %vm249_vm7, %v244_v38, %v246_v46  ;;  %v214_v2 = vadd.f32 %v212_v20, %v185_v9 }
  0x94   :  { %v250_v52 = vsel %vm249_vm7, %v246_v46, %v248_v49  ;;  %v252_v58 = vsel %vm249_vm7, %v248_v49, %v244_v38  ;;  %v253_v14 = vmul.f32 %v345_v63, %v251_v4 }
  0x95   :  { %v254_v55 = vmul.f32 %v346_v45, %v250_v52  ;;  %v255_v7 = vmul.f32 %v347_v57, %v252_v58 }
  0x97   :  { %v258_v6 = vrot.slane %v254_v55, 4  ;;  %v262_v25 = vadd.f32 %v255_v7, %v215_v13 }
  0x99   :  { %v259_v24 = vsel %vm182_vm10, %v253_v14, %v258_v6 }
  0x9a   :  { %v273_v12 = vpop.permute.xlu0 %272  ;;  %v261_v29 = vadd.f32 %v259_v24, %v214_v2 }
  0x9b   :  { %v275_v15 = vpop.permute.xlu1 %274  ;;  %v281_v23 = vsel %vm278_vm15, %v277_v8, %v273_v12 }
  0x9c   :  { %v279_v21 = vsel %vm278_vm15, %v275_v15, %v277_v8  ;;  %v280_v22 = vsel %vm278_vm15, %v273_v12, %v275_v15  ;;  %v282_v28 = vmul.f32 %v348_v16, %v281_v23 }
  0x9d   :  { %v284_v17 = vmul.f32 %v350_v10, %v279_v21  ;;  %v283_v26 = vmul.f32 %v349_v11, %v280_v22 }
  0x9f   :  { %v291_v27 = vadd.f32 %v284_v17, %v262_v25  ;;  %v287_v18 = vrot.slane %v283_v26, 4 }
  0xa1   :  { %v293_v30 = vmax.f32 %v291_v27, 1e-16  ;;  %v288_v31 = vsel %vm182_vm10, %v282_v28, %v287_v18 }
  0xa2   :  { %v290_v32 = vadd.f32 %v288_v31, %v261_v29 }
  0xa3   :  { %359 = vrsqrt.f32 %v293_v30  ;;  %vm310_vm1 = vweird.f32 %v293_v30 }
  0xa4   :  { %v292_v19 = vmax.f32 %v290_v32, 1e-16 }
  0xa6   :  { %361 = vrsqrt.f32 %v292_v19  ;;  %vm300_vm4 = vweird.f32 %v292_v19 }
  0xa9   :  { %v360_v33 = vpop.eup %359 }
  0xaa   :  { %v305_v34 = vmul.f32 %v360_v33, %v293_v30  ;;  %vm311_vm0 = vweird.f32 %v360_v33 }
  0xab   :  { %vm312_vm2 = vmor %vm310_vm1, %vm311_vm0 }
  0xac   :  { %v362_v35 = vpop.eup %361  ;;  %v306_v36 = vmul.f32 %v360_v33, %v305_v34 }
  0xad   :  { %v295_v37 = vmul.f32 %v362_v35, %v292_v19  ;;  %vm301_vm3 = vweird.f32 %v362_v35 }
  0xae   :  { %v307_v38 = vmul.f32 0.5, %v306_v36  ;;  %vm302_vm5 = vmor %vm300_vm4, %vm301_vm3 }
  0xaf   :  { %v296_v39 = vmul.f32 %v362_v35, %v295_v37 }
  0xb0   :  { %v308_v40 = vsub.f32 1.5, %v307_v38 }
  0xb1   :  { %v297_v41 = vmul.f32 0.5, %v296_v39 }
  0xb2   :  { %v309_v42 = vmul.f32 %v360_v33, %v308_v40 }
  0xb3   :  { %v298_v44 = vsub.f32 1.5, %v297_v41 }
  0xb4   :  { %v313_v45 = vsel %vm312_vm2, %v360_v33, %v309_v42 }
  0xb5   :  { %v299_v46 = vmul.f32 %v362_v35, %v298_v44  ;;  %v317_v47 = vmul.f32 %v315_v43, %v313_v45 }
  0xb7   :  { %v303_v48 = vsel %vm302_vm5, %v362_v35, %v299_v46  ;;  %v319_v49 = vmul.f32 %v317_v47, %v443_v1 }
  0xb8   :  { %v316_v50 = vmul.f32 %v315_v43, %v303_v48 }
  0xb9   :  { %321 = vst [vmem:[#allocation6 + $0x8] sm:$0xf] %v319_v49 }
  0xba   :  { %v318_v51 = vmul.f32 %v316_v50, %v441_v0 }
  0xbc   :  { %320 = vst [vmem:[#allocation6] sm:$0xff] %v318_v51 }
  0xbd   :  { %332 = dma.vmem_to_hbm [thread:$0]  %s328_s20, 192, %s330_s23, [#allocation5]  }
  0xbe   :  { %413 = dma.done.wait [#allocation5], 192  }
  0xbf   :  { %414 = vsyncadd [#allocation5], 4294967104 }
  0xc0   :  { %337 = vsyncpa [#allocation4], 1 }
  0xc1   :  { %338 = vsyncpa [#allocation5], 1 }

</bundles_post_ra>
